<compile_context>
chip_gen: v7x
topology: tpu7x:2x2x1
jax: 0.10.0
libtpu: 0.0.40
codegen_flags: <defaults>
</compile_context>

<pallas_src>
import functools
import math

import jax
import jax.numpy as jnp
from jax import lax
from jax.experimental import pallas as pl
from jax.experimental.pallas import tpu as pltpu


# ---- kernel ------------------------------------------------------------------
def _label_smoothing_kernel(x_ref, tgt_ref, loss_ref, dist_ref, acc_ref, *,
                            pad_idx, tile_v, confidence, smooth_val,
                            log_confidence, log_smooth):
    k = pl.program_id(1)                      # vocab (reduction) tile index

    @pl.when(k == 0)
    def _():
        acc_ref[...] = jnp.zeros_like(acc_ref)

    x = x_ref[...]                            # (TN, TV) f32 log-probabilities
    tgt = tgt_ref[...]                        # (TN, 1)  i32 target indices

    # Global column ids for this vocab tile; scatter_/index_fill_ become selects.
    col = lax.broadcasted_iota(jnp.int32, x.shape, 1) + k * tile_v   # (TN, TV)
    is_tgt_col = col == tgt                                          # (TN, TV)
    row_is_pad = tgt == pad_idx                                      # (TN, 1)
    valid = jnp.logical_and(col != pad_idx, jnp.logical_not(row_is_pad))

    conf = jnp.float32(confidence)
    smv = jnp.float32(smooth_val)
    true_dist = jnp.where(valid, jnp.where(is_tgt_col, conf, smv), 0.0)
    dist_ref[...] = true_dist

    # KLDivLoss(reduction='sum'): y * (log(y) - x), 0 contribution where y == 0.
    # log(y) takes only two values -> compile-time constants (no EUP work).
    log_td = jnp.where(is_tgt_col, jnp.float32(log_confidence),
                       jnp.float32(log_smooth))
    terms = jnp.where(valid, true_dist * (log_td - x), 0.0)

    acc_ref[...] += jnp.sum(terms, axis=1, keepdims=True)            # (TN, 1)

    @pl.when(k == pl.num_programs(1) - 1)
    def _():
        loss_ref[...] = acc_ref[...]


# ---- wrapper -----------------------------------------------------------------
@functools.partial(jax.jit,
                   static_argnames=("size", "pad_idx", "smoothing",
                                    "tile_n", "tile_v"))
def label_smoothing(x, tgt, *, size, pad_idx=0, smoothing=0.1,
                    tile_n=256, tile_v=512):
    n, v = x.shape
    assert v == size                      # mirrors the module's assert
    assert v % 128 == 0, "vocab axis must be a multiple of 128 (lane-dense)"
    tn = min(tile_n, n)
    tv = min(tile_v, v)
    assert n % tn == 0 and (tn % 8 == 0 or tn == n)
    assert v % tv == 0 and tv % 128 == 0
    grid = (n // tn, v // tv)

    x = x.astype(jnp.float32)
    tgt2 = tgt.reshape(n, 1).astype(jnp.int32)

    kernel = functools.partial(
        _label_smoothing_kernel,
        pad_idx=pad_idx,
        tile_v=tv,
        confidence=1.0 - smoothing,
        smooth_val=smoothing / (size - 2),
        log_confidence=math.log(1.0 - smoothing),
        log_smooth=math.log(smoothing / (size - 2)),
    )

    loss_rows, true_dist = pl.pallas_call(
        kernel,
        out_shape=(jax.ShapeDtypeStruct((n, 1), jnp.float32),   # per-row loss
                   jax.ShapeDtypeStruct((n, v), jnp.float32)),  # true_dist
        grid_spec=pltpu.PrefetchScalarGridSpec(
            num_scalar_prefetch=0,
            grid=grid,
            in_specs=[pl.BlockSpec((tn, tv), lambda i, k: (i, k)),   # x
                      pl.BlockSpec((tn, 1), lambda i, k: (i, 0))],   # tgt
            out_specs=(pl.BlockSpec((tn, 1), lambda i, k: (i, 0)),   # loss rows
                       pl.BlockSpec((tn, tv), lambda i, k: (i, k))), # true_dist
            scratch_shapes=[pltpu.VMEM((tn, 1), jnp.float32)],       # accumulator
        ),
        compiler_params=pltpu.CompilerParams(
            dimension_semantics=("parallel", "arbitrary")),
    )(x, tgt2)

    # Tiny (N,1) -> scalar reduction in plain JAX (safe with the parallel row axis).
    return jnp.sum(loss_rows), true_dist


# ---- pure-JAX reference (same math, no Pallas) ---------------------------------
def label_smoothing_ref(x, tgt, *, size, pad_idx=0, smoothing=0.1):
    n, v = x.shape
    confidence = 1.0 - smoothing
    smooth_val = smoothing / (size - 2)
    true_dist = jnp.full((n, v), smooth_val, jnp.float32)
    true_dist = true_dist.at[jnp.arange(n), tgt].set(confidence)
    true_dist = true_dist.at[:, pad_idx].set(0.0)
    true_dist = jnp.where((tgt == pad_idx)[:, None], 0.0, true_dist)
    positive = true_dist > 0.0
    safe = jnp.where(positive, true_dist, 1.0)
    loss = jnp.sum(jnp.where(positive, true_dist * (jnp.log(safe) - x), 0.0))
    return loss, true_dist


if __name__ == "__main__":
    B, S = 2, 8                 # label smoothing acts on flattened token rows
    N = B * S                   # 16 rows
    V = 128                     # vocab size (lane-dense: multiple of 128)
    PAD_IDX, SMOOTHING = 0, 0.1

    key = jax.random.PRNGKey(0)
    kx, kt = jax.random.split(key)

    # log-probabilities, as KLDivLoss / the transformer generator expects
    logits = jax.random.normal(kx, (N, V), jnp.float32)
    x = jax.nn.log_softmax(logits, axis=-1)

    # targets in [1, V); force a couple of padded (== pad_idx) rows
    tgt = jax.random.randint(kt, (N,), 1, V, dtype=jnp.int32)
    tgt = tgt.at[3].set(PAD_IDX).at[10].set(PAD_IDX)

    loss, true_dist = label_smoothing(x, tgt, size=V, pad_idx=PAD_IDX,
                                      smoothing=SMOOTHING)
    loss = jax.block_until_ready(loss)

    loss_ref_v, dist_ref_v = label_smoothing_ref(x, tgt, size=V,
                                                 pad_idx=PAD_IDX,
                                                 smoothing=SMOOTHING)
    assert loss.shape == ()
    assert true_dist.shape == (N, V)
    assert jnp.allclose(true_dist, dist_ref_v, atol=1e-6, rtol=1e-6), \
        f"true_dist max abs err {jnp.max(jnp.abs(true_dist - dist_ref_v))}"
    assert jnp.allclose(loss, loss_ref_v, atol=1e-3, rtol=1e-4), \
        f"loss err {abs(float(loss) - float(loss_ref_v))}"
    print("KERNEL_OK")
</pallas_src>

<mosaic_0001>
module attributes {stable_mosaic.version = 11 : i64} {
  func.func @_label_smoothing_kernel(%arg0: i32, %arg1: i32, %arg2: memref<16x128xf32, #tpu.memory_space<vmem>>, %arg3: memref<16x1xi32, #tpu.memory_space<vmem>>, %arg4: memref<16x1xf32, #tpu.memory_space<vmem>>, %arg5: memref<16x128xf32, #tpu.memory_space<vmem>>, %arg6: memref<16x1xf32, #tpu.memory_space<vmem>>) attributes {dimension_semantics = [#tpu.dimension_semantics<parallel>, #tpu.dimension_semantics<arbitrary>], iteration_bounds = array<i64: 1, 1>, scalar_prefetch = 0 : i64, scratch_operands = 1 : i64, tpu.core_type = #tpu.core_type<tc>, window_params = [{transform_indices = @transform_0, window_bounds = array<i64: 16, 128>}, {transform_indices = @transform_1, window_bounds = array<i64: 16, 1>}, {transform_indices = @transform_2, window_bounds = array<i64: 16, 1>}, {transform_indices = @transform_3, window_bounds = array<i64: 16, 128>}]} {
    %c0_i32 = arith.constant 0 : i32
    %0 = arith.cmpi eq, %arg1, %c0_i32 : i32
    %1 = arith.extui %0 : i1 to i32
    %c0_i32_0 = arith.constant 0 : i32
    %2 = arith.cmpi ne, %1, %c0_i32_0 : i32
    scf.if %2 {
      %cst_21 = arith.constant 0.000000e+00 : f32
      %39 = vector.broadcast %cst_21 : f32 to vector<16x1xf32>
      %c0_22 = arith.constant 0 : index
      %c0_23 = arith.constant 0 : index
      %40 = vector.load %arg6[%c0_22, %c0_23] : memref<16x1xf32, #tpu.memory_space<vmem>>, vector<16x1xf32>
      tpu.vector_store %arg6[%c0_22, %c0_23], %39 {strides = array<i32>} : memref<16x1xf32, #tpu.memory_space<vmem>>, vector<16x1xf32>,
    } else {
    }
    %c0 = arith.constant 0 : index
    %c0_1 = arith.constant 0 : index
    %3 = vector.load %arg2[%c0, %c0_1] : memref<16x128xf32, #tpu.memory_space<vmem>>, vector<16x128xf32>
    %c0_2 = arith.constant 0 : index
    %c0_3 = arith.constant 0 : index
    %4 = vector.load %arg3[%c0_2, %c0_3] : memref<16x1xi32, #tpu.memory_space<vmem>>, vector<16x1xi32>
    %5 = tpu.iota {dimensions = array<i32: 1>} : vector<16x128xi32>
    %c128_i32 = arith.constant 128 : i32
    %6 = arith.muli %arg1, %c128_i32 : i32
    %7 = vector.broadcast %6 : i32 to vector<16x128xi32>
    %8 = arith.addi %5, %7 : vector<16x128xi32>
    %9 = vector.broadcast %4 : vector<16x1xi32> to vector<16x128xi32>
    %10 = arith.cmpi eq, %8, %9 : vector<16x128xi32>
    %c0_i32_4 = arith.constant 0 : i32
    %11 = vector.broadcast %c0_i32_4 : i32 to vector<16x1xi32>
    %12 = arith.cmpi eq, %4, %11 : vector<16x1xi32>
    %c0_i32_5 = arith.constant 0 : i32
    %13 = vector.broadcast %c0_i32_5 : i32 to vector<16x128xi32>
    %14 = arith.cmpi ne, %8, %13 : vector<16x128xi32>
    %cst = arith.constant dense<true> : vector<16x1xi1>
    %15 = arith.xori %12, %cst : vector<16x1xi1>
    %16 = vector.broadcast %15 : vector<16x1xi1> to vector<16x128xi1>
    %17 = arith.andi %14, %16 : vector<16x128xi1>
    %cst_6 = arith.constant 0.899999976 : f32
    %cst_7 = arith.constant 7.93650805E-4 : f32
    %18 = vector.broadcast %cst_6 : f32 to vector<16x128xf32>
    %19 = vector.broadcast %cst_7 : f32 to vector<16x128xf32>
    %20 = arith.select %10, %18, %19 : vector<16x128xi1>, vector<16x128xf32>
    %cst_8 = arith.constant 0.000000e+00 : f32
    %21 = vector.broadcast %cst_8 : f32 to vector<16x128xf32>
    %22 = arith.select %17, %20, %21 : vector<16x128xi1>, vector<16x128xf32>
    %c0_9 = arith.constant 0 : index
    %c0_10 = arith.constant 0 : index
    %23 = vector.load %arg5[%c0_9, %c0_10] : memref<16x128xf32, #tpu.memory_space<vmem>>, vector<16x128xf32>
    tpu.vector_store %arg5[%c0_9, %c0_10], %22 {strides = array<i32>} : memref<16x128xf32, #tpu.memory_space<vmem>>, vector<16x128xf32>,
    %cst_11 = arith.constant -0.105360515 : f32
    %cst_12 = arith.constant -7.1388669 : f32
    %24 = vector.broadcast %cst_11 : f32 to vector<16x128xf32>
    %25 = vector.broadcast %cst_12 : f32 to vector<16x128xf32>
    %26 = arith.select %10, %24, %25 : vector<16x128xi1>, vector<16x128xf32>
    %27 = arith.subf %26, %3 : vector<16x128xf32>
    %28 = arith.mulf %22, %27 : vector<16x128xf32>
    %cst_13 = arith.constant 0.000000e+00 : f32
    %29 = vector.broadcast %cst_13 : f32 to vector<16x128xf32>
    %30 = arith.select %17, %28, %29 : vector<16x128xi1>, vector<16x128xf32>
    %c0_14 = arith.constant 0 : index
    %c0_15 = arith.constant 0 : index
    %31 = vector.load %arg6[%c0_14, %c0_15] : memref<16x1xf32, #tpu.memory_space<vmem>>, vector<16x1xf32>
    %cst_16 = arith.constant dense<0.000000e+00> : vector<16xf32>
    %32 = vector.multi_reduction <add>, %30, %cst_16 [1] : vector<16x128xf32> to vector<16xf32>
    %33 = vector.shape_cast %32 : vector<16xf32> to vector<16x1xf32>
    %34 = arith.addf %31, %33 : vector<16x1xf32>
    %c0_17 = arith.constant 0 : index
    %c0_18 = arith.constant 0 : index
    %35 = vector.load %arg6[%c0_17, %c0_18] : memref<16x1xf32, #tpu.memory_space<vmem>>, vector<16x1xf32>
    tpu.vector_store %arg6[%c0_17, %c0_18], %34 {strides = array<i32>} : memref<16x1xf32, #tpu.memory_space<vmem>>, vector<16x1xf32>,
    %c0_i32_19 = arith.constant 0 : i32
    %36 = arith.cmpi eq, %arg1, %c0_i32_19 : i32
    %37 = arith.extui %36 : i1 to i32
    %c0_i32_20 = arith.constant 0 : i32
    %38 = arith.cmpi ne, %37, %c0_i32_20 : i32
    scf.if %38 {
      %c0_21 = arith.constant 0 : index
      %c0_22 = arith.constant 0 : index
      %39 = vector.load %arg6[%c0_21, %c0_22] : memref<16x1xf32, #tpu.memory_space<vmem>>, vector<16x1xf32>
      %c0_23 = arith.constant 0 : index
      %c0_24 = arith.constant 0 : index
      %40 = vector.load %arg4[%c0_23, %c0_24] : memref<16x1xf32, #tpu.memory_space<vmem>>, vector<16x1xf32>
      tpu.vector_store %arg4[%c0_23, %c0_24], %39 {strides = array<i32>} : memref<16x1xf32, #tpu.memory_space<vmem>>, vector<16x1xf32>,
    } else {
    }
    return
  }
  func.func @transform_0(%arg0: i32, %arg1: i32) -> (i32, i32) {
    %c0_i32 = arith.constant 0 : i32
    return %arg0, %arg1 : i32, i32
  }
  func.func @transform_1(%arg0: i32, %arg1: i32) -> (i32, i32) {
    %c0_i32 = arith.constant 0 : i32
    %c0_i32_0 = arith.constant 0 : i32
    return %arg0, %c0_i32 : i32, i32
  }
  func.func @transform_2(%arg0: i32, %arg1: i32) -> (i32, i32) {
    %c0_i32 = arith.constant 0 : i32
    %c0_i32_0 = arith.constant 0 : i32
    return %arg0, %c0_i32 : i32, i32
  }
  func.func @transform_3(%arg0: i32, %arg1: i32) -> (i32, i32) {
    %c0_i32 = arith.constant 0 : i32
    return %arg0, %arg1 : i32, i32
  }
}

</mosaic_0001>

<bundles_post_ra>
// kernel: label_smoothing.1
= control target key start
LH: loop header
LB: loop body
LE: loop exit
PB: predicated region body
PF: predicated region fallthrough
CT: control target
= control target key end

     0   :  { %v141_v2 = vmov 0   ;;  %vm142_vm2 = vmmov 1   ;;  %s207_s0 = inlined_call_operand.vmem [shape: f32[16,128], index: 0, kind: input, shape index: {}]   ;;  %s208_s1 = inlined_call_operand.vmem [shape: s32[16,1], index: 1, kind: input, shape index: {}]   ;;  %s209_s2 = inlined_call_operand.vmem [shape: f32[16,1], index: 2, kind: output, shape index: {0}]   ;;  %s210_s3 = inlined_call_operand.hbm [shape: f32[16,128], index: 3, kind: output, shape index: {1}]  }
   0x1   :  { %v23_v0 = vld [vmem:[%s208_s1] sm:$0xff]  ;;  %v24_v1 = vld [vmem:[%s208_s1 + $0x8] sm:$0xff]  ;;  %115 = vset.pattern.permute.xlu0 %v141_v2  ;;  %116 = vset.pattern.permute.xlu1 %v141_v2 }
   0x2   :  { %vm38_vm0 = vcmp.eq.s32.totalorder %v23_v0, 0  ;;  %vm39_vm1 = vcmp.eq.s32.totalorder %v24_v1, 0  ;;  %31 = vperm.xlu0 %115, %v23_v0  }
   0x3   :  { %vm41_vm3 = vmxor %vm38_vm0, %vm142_vm2 }
   0x4   :  { %v43_v3 = vsel %vm41_vm3, 1, %v141_v2  ;;  %vm42_vm4 = vmxor %vm39_vm1, %vm142_vm2 }
   0x5   :  { %46 = vperm.xlu1 %116, %v43_v3  }
   0x6   :  { %9 = vsyncpa [#allocation4], 0  ;;  %v44_v4 = vsel %vm42_vm4, 1, %v141_v2  ;;  %34 = vperm.xlu0 %115, %v24_v1   ;;  %v25_v5 = vlaneseq  ;;  %v21_v8 = vld [vmem:[%s207_s0] sm:$0xff]  ;;  %v143_v9 = vmov 0.0007936508  }
   0x7   :  { %v144_v11 = vmov -7.138867   ;;  %v22_v16 = vld [vmem:[%s207_s0 + $0x8] sm:$0xff]  ;;  %vm18_vm12 = vcmask 7168   ;;  %v145_v27 = vmov 0.0   ;;  %s146_s0 = smov [#allocation3]  }
   0x8   :  { %v26_v6 = vand.u32 127, %v25_v5  ;;  %19 = vst.msk [vmem:[#allocation2] sm:$0xff] %vm18_vm12, %v145_v27  ;;  %20 = vst.msk [vmem:[#allocation2 + $0x8] sm:$0xff] %vm18_vm12, %v145_v27  ;;  %s94_s19 = sshll.u32 %s146_s0, 4  ;;  %s95_s19 = int_to_ptr.vmem [resolvable:$true] %s94_s19 }
   0x9   :  { %49 = vperm.xlu1 %116, %v44_v4   ;;  %s117_s20 = scalar_lea.vmem %s95_s19, 256  ;;  %p122_p1 = scmp.lt.s32.totalorder %s95_s19, %s95_s19 }
   0xa   :  { %vm40_vm6 = vcmp.ne.s32.totalorder %v26_v6, 0  ;;  %p118_p0 = scmp.ne.s32.totalorder %s95_s19, %s117_s20  ;;  %p123_p2 = scmp.lt.s32.totalorder %s117_s20, %s117_s20 }
   0xc   :  { %p124_p3 = por %p123_p2, %p122_p1 }
   0xe   :  { %p125_p4 = pnand %p124_p3, %p118_p0 }
  0x81   :  { %v32_v7 = vpop.permute.xlu0 %31 }
  0x82   :  { %vm36_vm5 = vcmp.eq.s32.totalorder %v26_v6, %v32_v7 }
  0x83   :  { %v55_v10 = vsel %vm36_vm5, 0.9, %v143_v9  ;;  %v61_v12 = vsel %vm36_vm5, -0.105360515, %v144_v11 }
  0x84   :  { %v47_v13 = vpop.permute.xlu1 %46  ;;  %v63_v14 = vsub.f32 %v61_v12, %v21_v8 }
  0x85   :  { %vm51_vm7 = vcmp.eq.s32.totalorder %v47_v13, 1  ;;  %v35_v15 = vpop.permute.xlu0 %34 }
  0x86   :  { %vm53_vm8 = vmand %vm40_vm6, %vm51_vm7  ;;  %vm37_vm9 = vcmp.eq.s32.totalorder %v26_v6, %v35_v15 }
  0x87   :  { %v57_v17 = vsel %vm53_vm8, %v55_v10, 0.0  ;;  %v62_v18 = vsel %vm37_vm9, -0.105360515, %v144_v11  ;;  %v56_v22 = vsel %vm37_vm9, 0.9, %v143_v9 }
  0x88   :  { %v50_v19 = vpop.permute.xlu1 %49  ;;  %59 = vst [vmem:[#allocation3] sm:$0xff] %v57_v17  ;;  %v65_v20 = vmul.f32 %v63_v14, %v57_v17  ;;  %v64_v21 = vsub.f32 %v62_v18, %v22_v16 }
  0x89   :  { %vm52_vm10 = vcmp.eq.s32.totalorder %v50_v19, 1 }
  0x8a   :  { %v67_v23 = vsel %vm53_vm8, %v65_v20, 0.0  ;;  %vm54_vm11 = vmand %vm40_vm6, %vm52_vm10 }
  0x8b   :  { %71 = vadd.xlane.f32.xlu0 %v67_v23  ;;  %v58_v24 = vsel %vm54_vm11, %v56_v22, 0.0 }
  0x8c   :  { %60 = vst [vmem:[#allocation3 + $0x8] sm:$0xff] %v58_v24  ;;  %v66_v25 = vmul.f32 %v64_v21, %v58_v24 }
  0x8e   :  { %v68_v26 = vsel %vm54_vm11, %v66_v25, 0.0 }
  0x8f   :  { %73 = vadd.xlane.f32.xlu1 %v68_v26 }
  0x90   :  { %128 = shalt.err (!%p125_p4)
}
  0x91   :  { %s129_s23 = scalar_lea.hbm %s210_s3, 256 }
  0x92   :  { %p130_p5 = scmp.ne.s32.totalorder %s210_s3, %s129_s23  ;;  %p133_p6 = scmp.lt.u32.totalorder %s129_s23, %s210_s3 }
  0x94   :  { %p135_p7 = pnand %p133_p6, %p130_p5 }
  0x96   :  { %138 = shalt.err (!%p135_p7)
}
  0x97   :  { %s147_s28 = smov 128   ;;  %s148_s29 = smov 8   ;;  %v69_v28 = vld [vmem:[#allocation2] sm:$0xff]  ;;  %v70_v31 = vld [vmem:[#allocation2 + $0x8] sm:$0xff] }
  0x98   :  { %100 = dma.vmem_to_hbm [thread:$0]  %s95_s19, 256, %s210_s3, [#allocation4], %s147_s28, %s147_s28, %s148_s29  }
 0x118   :  { %v72_v29 = vpop.xlane.xlu0 %71 }
 0x119   :  { %v75_v30 = vadd.f32 %v72_v29, %v69_v28 }
 0x11b   :  { %78 = vst.msk [vmem:[#allocation2] sm:$0xff] %vm18_vm12, %v75_v30 }
 0x11c   :  { %v74_v32 = vpop.xlane.xlu1 %73 }
 0x11d   :  { %v76_v33 = vadd.f32 %v74_v32, %v70_v31 }
 0x11f   :  { %79 = vst.msk [vmem:[#allocation2 + $0x8] sm:$0xff] %vm18_vm12, %v76_v33 }
 0x122   :  { %v83_v34 = vld [vmem:[#allocation2] sm:$0xff] }
 0x123   :  { %85 = vst.msk [vmem:[%s209_s2] sm:$0xff] %vm18_vm12, %v83_v34 }
 0x126   :  { %v84_v35 = vld [vmem:[#allocation2 + $0x8] sm:$0xff] }
 0x127   :  { %86 = vst.msk [vmem:[%s209_s2 + $0x8] sm:$0xff] %vm18_vm12, %v84_v35 }
 0x128   :  { %139 = dma.done.wait [#allocation4], 256  }
 0x129   :  { %140 = vsyncadd [#allocation4], 4294967040 }
 0x12a   :  { %106 = vsyncpa [#allocation4], 1 }

</bundles_post_ra>
